<compile_context>
chip_gen: v7x
topology: tpu7x:2x2x1
jax: 0.10.0
libtpu: 0.0.40
codegen_flags: <defaults>
</compile_context>

<pallas_src>
import functools

import jax
import jax.numpy as jnp
from jax.experimental import pallas as pl
from jax.experimental.pallas import tpu as pltpu


# ---------------------------------------------------------------------------
# Fused Pallas kernel: conv stack + flatten + linear head
# ---------------------------------------------------------------------------

def _encoder_kernel(n_layers, B, H, x_ref, *refs):
    """Fused encoder.

    x_ref:      (B*H, W*Cin) f32   NHWC activation with (w, c) merged on lanes and
                                   all images stacked along rows (per-image stride H).
    conv refs:  per layer: wb (3, Wi*Ci, Wo*Co) bf16 banded weights, bias (1, Wo*Co) f32
                (last layer's Co is zero-padded so Wo*Co == 128).
    head refs:  w_head (Ho*Wo*Co, 2*hid) bf16 (flatten permutation pre-folded),
                b_head (1, 2*hid) f32.
    output:     (B, 2*hid) f32 = [mean | scale], scale already exp(std/2).
    """
    conv_refs = refs[:2 * n_layers]
    w_head_ref, b_head_ref, out_ref = refs[2 * n_layers:]

    hid = out_ref.shape[1] // 2
    ho_final = H - 2 * n_layers

    a = x_ref[...]                       # (B*H, W*Cin) f32
    rows = a.shape[0]

    # ---- conv stack: each 3x3 valid conv = K shifted banded matmuls over ALL images ----
    # Fixed per-image row stride H: output rows b*H + [0, H - 2*(l+1)) are valid; the
    # straddle rows at the end of each image block are garbage and are never read
    # (valid outputs of layer l+1 only ever read valid outputs of layer l).
    for l in range(n_layers):
        wb_ref = conv_refs[2 * l]        # (K, Wi*Ci, Wo*Co) bf16
        bias = conv_refs[2 * l + 1][...]  # (1, Wo*Co) f32
        k = wb_ref.shape[0]
        out_rows = rows - (k - 1)
        acc = jnp.dot(a[0:out_rows, :].astype(jnp.bfloat16), wb_ref[0],
                      preferred_element_type=jnp.float32)
        for dy in range(1, k):
            acc = acc + jnp.dot(a[dy:dy + out_rows, :].astype(jnp.bfloat16), wb_ref[dy],
                                preferred_element_type=jnp.float32)
        a = jnp.maximum(acc + bias, 0.0)  # f32, (out_rows, Wo*Co)
        rows = out_rows

    # ---- head: per-image flatten onto lanes (128-aligned concat) + ONE matmul ----
    flat_imgs = []
    for b in range(B):
        base = b * H
        pieces = [a[base + i:base + i + 1, :] for i in range(ho_final)]  # (1, 128) each
        flat_imgs.append(jnp.concatenate(pieces, axis=1))                # (1, Ho*128)
    x_flat = jnp.concatenate(flat_imgs, axis=0).astype(jnp.bfloat16)     # (B, Ho*128)

    h = jnp.dot(x_flat, w_head_ref[...], preferred_element_type=jnp.float32)
    h = jnp.maximum(h + b_head_ref[...], 0.0)                            # (B, 2*hid) f32

    # mean on lanes [0, hid), scale = exp(std/2) on lanes [hid, 2*hid) -- single store.
    lane = jax.lax.broadcasted_iota(jnp.int32, h.shape, 1)
    out_ref[...] = jnp.where(lane >= hid, jnp.exp(h * 0.5), h)


@jax.jit
def encoder_forward(x_nchw, banded_ws, bias_rows, w_head_flat, b_head_row):
    """NCHW input -> (mean, scale). Single fused pallas_call."""
    B, C, H, W = x_nchw.shape
    # NCHW -> NHWC -> merge (W, C) onto lanes, stack images along rows (stride H).
    x = jnp.transpose(x_nchw, (0, 2, 3, 1)).reshape(B * H, W * C)

    n_layers = len(banded_ws)
    ins = [x]
    for wb, br in zip(banded_ws, bias_rows):
        ins += [wb, br]
    ins += [w_head_flat, b_head_row]

    h2 = w_head_flat.shape[1]
    hid = h2 // 2
    kernel = functools.partial(_encoder_kernel, n_layers, B, H)
    out = pl.pallas_call(
        kernel,
        out_shape=jax.ShapeDtypeStruct((B, h2), jnp.float32),
        in_specs=[pl.BlockSpec(memory_space=pltpu.MemorySpace.VMEM)] * len(ins),
        out_specs=pl.BlockSpec(memory_space=pltpu.MemorySpace.VMEM),
    )(*ins)
    return out[:, :hid], out[:, hid:]


# ---------------------------------------------------------------------------
# One-time weight preprocessing (outside jit)
# ---------------------------------------------------------------------------

def build_banded_weights(w_hwio, wi):
    """Fold the (dx, cin) contraction of a valid KxK conv into banded matrices.

    Returns (K, Wi*Ci, Wo*Co) with
      out[dy, jj*Ci + a, j*Co + b] = w[dy, jj-j, a, b]  if 0 <= jj-j < K else 0
    so that  y[i, j*Co+b] = sum_dy  x[i+dy, :] @ out[dy]  equals the conv.
    """
    k, _, ci, co = w_hwio.shape
    wo = wi - k + 1
    js = jnp.arange(wo)
    mats = []
    for dy in range(k):
        acc = jnp.zeros((wi, ci, wo, co), jnp.float32)
        for dx in range(k):
            sel = (js[None, :] + dx == jnp.arange(wi)[:, None]).astype(jnp.float32)
            acc = acc + jnp.einsum("Jj,ab->Jajb", sel, w_hwio[dy, dx])
        mats.append(acc.reshape(wi * ci, wo * co))
    return jnp.stack(mats)


def build_head_weights(w_full, b_full, ho, wo, co, co_pad):
    """Permute the PyTorch NCHW-flatten row order into the kernel's (i, j, c_pad) layout.

    w_full: (co*ho*wo, 2*hid) with rows ordered f = c*(ho*wo) + i*wo + j.
    Returns (ho*wo*co_pad, 2*hid) with row (i*wo + j)*co_pad + c = w_full[c*ho*wo + i*wo + j]
    for c < co, and zero rows for the padded channels (their activations are exactly 0).
    """
    h2 = w_full.shape[1]
    w4 = w_full.reshape(co, ho, wo, h2).transpose(1, 2, 0, 3)   # [i, j, c, :]
    if co_pad > co:
        pad = jnp.zeros((ho, wo, co_pad - co, h2), w_full.dtype)
        w4 = jnp.concatenate([w4, pad], axis=2)
    return w4.reshape(ho * wo * co_pad, h2), b_full.reshape(1, h2)


# ---------------------------------------------------------------------------
# Parameter init (matches the PyTorch module structure)
# ---------------------------------------------------------------------------

def init_conv_params(key, in_chan, hid_chan, n_conv, k=3):
    convs = []
    chans = [in_chan] + [hid_chan] * (n_conv + 1)
    for i in range(n_conv + 1):
        key, kw, kb = jax.random.split(key, 3)
        cin, cout = chans[i], chans[i + 1]
        fan_in = cin * k * k
        w = jax.random.normal(kw, (k, k, cin, cout),
                              jnp.float32) / jnp.sqrt(float(fan_in))
        b = jax.random.normal(kb, (cout,), jnp.float32) * 0.01
        convs.append((w, b))
    return convs, key


def init_head(key, flat_size, hid_size):
    key, kw, kb = jax.random.split(key, 3)
    w = jax.random.normal(kw, (flat_size, 2 * hid_size),
                          jnp.float32) / jnp.sqrt(float(flat_size))
    b = jax.random.normal(kb, (2 * hid_size,), jnp.float32) * 0.01
    return w, b, key


# ---------------------------------------------------------------------------
# Pure-JAX f32 reference (uses the original, un-expanded weights)
# ---------------------------------------------------------------------------

def encoder_reference(x_nchw, conv_params, w_head, b_head):
    x = jnp.transpose(x_nchw, (0, 2, 3, 1))
    for (w, b) in conv_params:
        x = jax.lax.conv_general_dilated(
            x, w, window_strides=(1, 1), padding="VALID",
            dimension_numbers=("NHWC", "HWIO", "NHWC"))
        x = jnp.maximum(x + b.reshape(1, 1, 1, -1), 0.0)
    B = x.shape[0]
    feat = jnp.transpose(x, (0, 3, 1, 2)).reshape(B, -1)    # PyTorch NCHW flatten
    h = jnp.maximum(feat @ w_head + b_head.reshape(1, -1), 0.0)
    hid = h.shape[1] // 2
    return h[:, :hid], jnp.exp(h[:, hid:] * 0.5)


# ---------------------------------------------------------------------------

if __name__ == "__main__":
    B, C_IN, H, W = 2, 4, 16, 16
    HID_CHAN, HID_SIZE, N_CONV = 8, 32, 3
    K = 3
    CO_PAD = 16   # pad last conv layer's out-channels so final lane width = 8*16 = 128

    key = jax.random.PRNGKey(0)
    key, kx = jax.random.split(key)
    x = jax.random.normal(kx, (B, C_IN, H, W), jnp.float32)   # PyTorch-style NCHW input

    conv_params, key = init_conv_params(key, C_IN, HID_CHAN, N_CONV, K)

    side = H - (N_CONV + 1) * (K - 1)                         # spatial after all convs
    flat_size = HID_CHAN * side * side                        # conv_shape.flat_size()
    w_head_full, b_head_full, key = init_head(key, flat_size, HID_SIZE)

    # One-time preprocessing: banded conv weights (bf16), tiled biases (f32),
    # zero-padded last layer, permuted + flattened head weight (bf16).
    n_layers = N_CONV + 1
    banded_ws, bias_rows = [], []
    wi = W
    for li, (w, b) in enumerate(conv_params):
        co = w.shape[3]
        if li == n_layers - 1 and CO_PAD > co:
            w = jnp.concatenate(
                [w, jnp.zeros((K, K, w.shape[2], CO_PAD - co), w.dtype)], axis=3)
            b = jnp.concatenate([b, jnp.zeros((CO_PAD - co,), b.dtype)], axis=0)
            co = CO_PAD
        wo = wi - K + 1
        banded_ws.append(build_banded_weights(w, wi).astype(jnp.bfloat16))
        bias_rows.append(jnp.tile(b, wo).reshape(1, wo * co).astype(jnp.float32))
        wi = wo

    w_head_flat, b_head_row = build_head_weights(
        w_head_full, b_head_full, side, side, HID_CHAN, CO_PAD)
    w_head_flat = w_head_flat.astype(jnp.bfloat16)

    mean, scale = encoder_forward(x, tuple(banded_ws), tuple(bias_rows),
                                  w_head_flat, b_head_row)
    jax.block_until_ready((mean, scale))

    ref_mean, ref_scale = encoder_reference(x, conv_params, w_head_full, b_head_full)
    assert mean.shape == (B, HID_SIZE) and scale.shape == (B, HID_SIZE)
    # bf16 MXU operands (f32 accumulation) through 5 matmul layers -> relaxed tolerance.
    assert jnp.allclose(mean, ref_mean, rtol=5e-2, atol=5e-2)
    assert jnp.allclose(scale, ref_scale, rtol=5e-2, atol=5e-2)

    # TODO(synk): the torch module returns a td.Independent(td.Normal(...), 1)
    # distribution object; we return its parameters (mean, scale) instead.
    print("KERNEL_OK")
</pallas_src>

<mosaic_0001>
module attributes {stable_mosaic.version = 11 : i64} {
  func.func @_encoder_kernel(%arg0: memref<32x64xf32, #tpu.memory_space<vmem>>, %arg1: memref<3x64x112xbf16, #tpu.memory_space<vmem>>, %arg2: memref<1x112xf32, #tpu.memory_space<vmem>>, %arg3: memref<3x112x96xbf16, #tpu.memory_space<vmem>>, %arg4: memref<1x96xf32, #tpu.memory_space<vmem>>, %arg5: memref<3x96x80xbf16, #tpu.memory_space<vmem>>, %arg6: memref<1x80xf32, #tpu.memory_space<vmem>>, %arg7: memref<3x80x128xbf16, #tpu.memory_space<vmem>>, %arg8: memref<1x128xf32, #tpu.memory_space<vmem>>, %arg9: memref<1024x64xbf16, #tpu.memory_space<vmem>>, %arg10: memref<1x64xf32, #tpu.memory_space<vmem>>, %arg11: memref<2x64xf32, #tpu.memory_space<vmem>>) attributes {dimension_semantics = [], scalar_prefetch = 0 : i64, scratch_operands = 0 : i64, tpu.core_type = #tpu.core_type<tc>} {
    %c0 = arith.constant 0 : index
    %c0_0 = arith.constant 0 : index
    %0 = vector.load %arg0[%c0, %c0_0] : memref<32x64xf32, #tpu.memory_space<vmem>>, vector<32x64xf32>
    %c0_1 = arith.constant 0 : index
    %c0_2 = arith.constant 0 : index
    %1 = vector.load %arg2[%c0_1, %c0_2] : memref<1x112xf32, #tpu.memory_space<vmem>>, vector<1x112xf32>
    %2 = vector.extract_strided_slice %0 {offsets = [0, 0], sizes = [30, 64], strides = [1, 1]} : vector<32x64xf32> to vector<30x64xf32>
    %3 = arith.truncf %2 : vector<30x64xf32> to vector<30x64xbf16>
    %c0_3 = arith.constant 0 : index
    %c0_4 = arith.constant 0 : index
    %c0_5 = arith.constant 0 : index
    %4 = vector.load %arg1[%c0_3, %c0_4, %c0_5] : memref<3x64x112xbf16, #tpu.memory_space<vmem>>, vector<1x64x112xbf16>
    %5 = vector.shape_cast %4 : vector<1x64x112xbf16> to vector<64x112xbf16>
    %cst = arith.constant dense<0.000000e+00> : vector<30x112xf32>
    %6 = tpu.matmul %3, %5, %cst {dimension_numbers = #tpu.dot_dimension_numbers<[1], [0], [0], [1], [0, 0, 1, 1], [], []>} : vector<30x64xbf16>, vector<64x112xbf16>, vector<30x112xf32> -> vector<30x112xf32>
    %7 = vector.extract_strided_slice %0 {offsets = [1, 0], sizes = [30, 64], strides = [1, 1]} : vector<32x64xf32> to vector<30x64xf32>
    %8 = arith.truncf %7 : vector<30x64xf32> to vector<30x64xbf16>
    %c1 = arith.constant 1 : index
    %c0_6 = arith.constant 0 : index
    %c0_7 = arith.constant 0 : index
    %9 = vector.load %arg1[%c1, %c0_6, %c0_7] : memref<3x64x112xbf16, #tpu.memory_space<vmem>>, vector<1x64x112xbf16>
    %10 = vector.shape_cast %9 : vector<1x64x112xbf16> to vector<64x112xbf16>
    %cst_8 = arith.constant dense<0.000000e+00> : vector<30x112xf32>
    %11 = tpu.matmul %8, %10, %cst_8 {dimension_numbers = #tpu.dot_dimension_numbers<[1], [0], [0], [1], [0, 0, 1, 1], [], []>} : vector<30x64xbf16>, vector<64x112xbf16>, vector<30x112xf32> -> vector<30x112xf32>
    %12 = arith.addf %6, %11 : vector<30x112xf32>
    %13 = vector.extract_strided_slice %0 {offsets = [2, 0], sizes = [30, 64], strides = [1, 1]} : vector<32x64xf32> to vector<30x64xf32>
    %14 = arith.truncf %13 : vector<30x64xf32> to vector<30x64xbf16>
    %c2 = arith.constant 2 : index
    %c0_9 = arith.constant 0 : index
    %c0_10 = arith.constant 0 : index
    %15 = vector.load %arg1[%c2, %c0_9, %c0_10] : memref<3x64x112xbf16, #tpu.memory_space<vmem>>, vector<1x64x112xbf16>
    %16 = vector.shape_cast %15 : vector<1x64x112xbf16> to vector<64x112xbf16>
    %cst_11 = arith.constant dense<0.000000e+00> : vector<30x112xf32>
    %17 = tpu.matmul %14, %16, %cst_11 {dimension_numbers = #tpu.dot_dimension_numbers<[1], [0], [0], [1], [0, 0, 1, 1], [], []>} : vector<30x64xbf16>, vector<64x112xbf16>, vector<30x112xf32> -> vector<30x112xf32>
    %18 = arith.addf %12, %17 : vector<30x112xf32>
    %19 = vector.broadcast %1 : vector<1x112xf32> to vector<30x112xf32>
    %20 = arith.addf %18, %19 : vector<30x112xf32>
    %cst_12 = arith.constant 0.000000e+00 : f32
    %21 = vector.broadcast %cst_12 : f32 to vector<30x112xf32>
    %22 = arith.maximumf %20, %21 : vector<30x112xf32>
    %c0_13 = arith.constant 0 : index
    %c0_14 = arith.constant 0 : index
    %23 = vector.load %arg4[%c0_13, %c0_14] : memref<1x96xf32, #tpu.memory_space<vmem>>, vector<1x96xf32>
    %24 = vector.extract_strided_slice %22 {offsets = [0, 0], sizes = [28, 112], strides = [1, 1]} : vector<30x112xf32> to vector<28x112xf32>
    %25 = arith.truncf %24 : vector<28x112xf32> to vector<28x112xbf16>
    %c0_15 = arith.constant 0 : index
    %c0_16 = arith.constant 0 : index
    %c0_17 = arith.constant 0 : index
    %26 = vector.load %arg3[%c0_15, %c0_16, %c0_17] : memref<3x112x96xbf16, #tpu.memory_space<vmem>>, vector<1x112x96xbf16>
    %27 = vector.shape_cast %26 : vector<1x112x96xbf16> to vector<112x96xbf16>
    %cst_18 = arith.constant dense<0.000000e+00> : vector<28x96xf32>
    %28 = tpu.matmul %25, %27, %cst_18 {dimension_numbers = #tpu.dot_dimension_numbers<[1], [0], [0], [1], [0, 0, 1, 1], [], []>} : vector<28x112xbf16>, vector<112x96xbf16>, vector<28x96xf32> -> vector<28x96xf32>
    %29 = vector.extract_strided_slice %22 {offsets = [1, 0], sizes = [28, 112], strides = [1, 1]} : vector<30x112xf32> to vector<28x112xf32>
    %30 = arith.truncf %29 : vector<28x112xf32> to vector<28x112xbf16>
    %c1_19 = arith.constant 1 : index
    %c0_20 = arith.constant 0 : index
    %c0_21 = arith.constant 0 : index
    %31 = vector.load %arg3[%c1_19, %c0_20, %c0_21] : memref<3x112x96xbf16, #tpu.memory_space<vmem>>, vector<1x112x96xbf16>
    %32 = vector.shape_cast %31 : vector<1x112x96xbf16> to vector<112x96xbf16>
    %cst_22 = arith.constant dense<0.000000e+00> : vector<28x96xf32>
    %33 = tpu.matmul %30, %32, %cst_22 {dimension_numbers = #tpu.dot_dimension_numbers<[1], [0], [0], [1], [0, 0, 1, 1], [], []>} : vector<28x112xbf16>, vector<112x96xbf16>, vector<28x96xf32> -> vector<28x96xf32>
    %34 = arith.addf %28, %33 : vector<28x96xf32>
    %35 = vector.extract_strided_slice %22 {offsets = [2, 0], sizes = [28, 112], strides = [1, 1]} : vector<30x112xf32> to vector<28x112xf32>
    %36 = arith.truncf %35 : vector<28x112xf32> to vector<28x112xbf16>
    %c2_23 = arith.constant 2 : index
    %c0_24 = arith.constant 0 : index
    %c0_25 = arith.constant 0 : index
    %37 = vector.load %arg3[%c2_23, %c0_24, %c0_25] : memref<3x112x96xbf16, #tpu.memory_space<vmem>>, vector<1x112x96xbf16>
    %38 = vector.shape_cast %37 : vector<1x112x96xbf16> to vector<112x96xbf16>
    %cst_26 = arith.constant dense<0.000000e+00> : vector<28x96xf32>
    %39 = tpu.matmul %36, %38, %cst_26 {dimension_numbers = #tpu.dot_dimension_numbers<[1], [0], [0], [1], [0, 0, 1, 1], [], []>} : vector<28x112xbf16>, vector<112x96xbf16>, vector<28x96xf32> -> vector<28x96xf32>
    %40 = arith.addf %34, %39 : vector<28x96xf32>
    %41 = vector.broadcast %23 : vector<1x96xf32> to vector<28x96xf32>
    %42 = arith.addf %40, %41 : vector<28x96xf32>
    %cst_27 = arith.constant 0.000000e+00 : f32
    %43 = vector.broadcast %cst_27 : f32 to vector<28x96xf32>
    %44 = arith.maximumf %42, %43 : vector<28x96xf32>
    %c0_28 = arith.constant 0 : index
    %c0_29 = arith.constant 0 : index
    %45 = vector.load %arg6[%c0_28, %c0_29] : memref<1x80xf32, #tpu.memory_space<vmem>>, vector<1x80xf32>
    %46 = vector.extract_strided_slice %44 {offsets = [0, 0], sizes = [26, 96], strides = [1, 1]} : vector<28x96xf32> to vector<26x96xf32>
    %47 = arith.truncf %46 : vector<26x96xf32> to vector<26x96xbf16>
    %c0_30 = arith.constant 0 : index
    %c0_31 = arith.constant 0 : index
    %c0_32 = arith.constant 0 : index
    %48 = vector.load %arg5[%c0_30, %c0_31, %c0_32] : memref<3x96x80xbf16, #tpu.memory_space<vmem>>, vector<1x96x80xbf16>
    %49 = vector.shape_cast %48 : vector<1x96x80xbf16> to vector<96x80xbf16>
    %cst_33 = arith.constant dense<0.000000e+00> : vector<26x80xf32>
    %50 = tpu.matmul %47, %49, %cst_33 {dimension_numbers = #tpu.dot_dimension_numbers<[1], [0], [0], [1], [0, 0, 1, 1], [], []>} : vector<26x96xbf16>, vector<96x80xbf16>, vector<26x80xf32> -> vector<26x80xf32>
    %51 = vector.extract_strided_slice %44 {offsets = [1, 0], sizes = [26, 96], strides = [1, 1]} : vector<28x96xf32> to vector<26x96xf32>
    %52 = arith.truncf %51 : vector<26x96xf32> to vector<26x96xbf16>
    %c1_34 = arith.constant 1 : index
    %c0_35 = arith.constant 0 : index
    %c0_36 = arith.constant 0 : index
    %53 = vector.load %arg5[%c1_34, %c0_35, %c0_36] : memref<3x96x80xbf16, #tpu.memory_space<vmem>>, vector<1x96x80xbf16>
    %54 = vector.shape_cast %53 : vector<1x96x80xbf16> to vector<96x80xbf16>
    %cst_37 = arith.constant dense<0.000000e+00> : vector<26x80xf32>
    %55 = tpu.matmul %52, %54, %cst_37 {dimension_numbers = #tpu.dot_dimension_numbers<[1], [0], [0], [1], [0, 0, 1, 1], [], []>} : vector<26x96xbf16>, vector<96x80xbf16>, vector<26x80xf32> -> vector<26x80xf32>
    %56 = arith.addf %50, %55 : vector<26x80xf32>
    %57 = vector.extract_strided_slice %44 {offsets = [2, 0], sizes = [26, 96], strides = [1, 1]} : vector<28x96xf32> to vector<26x96xf32>
    %58 = arith.truncf %57 : vector<26x96xf32> to vector<26x96xbf16>
    %c2_38 = arith.constant 2 : index
    %c0_39 = arith.constant 0 : index
    %c0_40 = arith.constant 0 : index
    %59 = vector.load %arg5[%c2_38, %c0_39, %c0_40] : memref<3x96x80xbf16, #tpu.memory_space<vmem>>, vector<1x96x80xbf16>
    %60 = vector.shape_cast %59 : vector<1x96x80xbf16> to vector<96x80xbf16>
    %cst_41 = arith.constant dense<0.000000e+00> : vector<26x80xf32>
    %61 = tpu.matmul %58, %60, %cst_41 {dimension_numbers = #tpu.dot_dimension_numbers<[1], [0], [0], [1], [0, 0, 1, 1], [], []>} : vector<26x96xbf16>, vector<96x80xbf16>, vector<26x80xf32> -> vector<26x80xf32>
    %62 = arith.addf %56, %61 : vector<26x80xf32>
    %63 = vector.broadcast %45 : vector<1x80xf32> to vector<26x80xf32>
    %64 = arith.addf %62, %63 : vector<26x80xf32>
    %cst_42 = arith.constant 0.000000e+00 : f32
    %65 = vector.broadcast %cst_42 : f32 to vector<26x80xf32>
    %66 = arith.maximumf %64, %65 : vector<26x80xf32>
    %c0_43 = arith.constant 0 : index
    %c0_44 = arith.constant 0 : index
    %67 = vector.load %arg8[%c0_43, %c0_44] : memref<1x128xf32, #tpu.memory_space<vmem>>, vector<1x128xf32>
    %68 = vector.extract_strided_slice %66 {offsets = [0, 0], sizes = [24, 80], strides = [1, 1]} : vector<26x80xf32> to vector<24x80xf32>
    %69 = arith.truncf %68 : vector<24x80xf32> to vector<24x80xbf16>
    %c0_45 = arith.constant 0 : index
    %c0_46 = arith.constant 0 : index
    %c0_47 = arith.constant 0 : index
    %70 = vector.load %arg7[%c0_45, %c0_46, %c0_47] : memref<3x80x128xbf16, #tpu.memory_space<vmem>>, vector<1x80x128xbf16>
    %71 = vector.shape_cast %70 : vector<1x80x128xbf16> to vector<80x128xbf16>
    %cst_48 = arith.constant dense<0.000000e+00> : vector<24x128xf32>
    %72 = tpu.matmul %69, %71, %cst_48 {dimension_numbers = #tpu.dot_dimension_numbers<[1], [0], [0], [1], [0, 0, 1, 1], [], []>} : vector<24x80xbf16>, vector<80x128xbf16>, vector<24x128xf32> -> vector<24x128xf32>
    %73 = vector.extract_strided_slice %66 {offsets = [1, 0], sizes = [24, 80], strides = [1, 1]} : vector<26x80xf32> to vector<24x80xf32>
    %74 = arith.truncf %73 : vector<24x80xf32> to vector<24x80xbf16>
    %c1_49 = arith.constant 1 : index
    %c0_50 = arith.constant 0 : index
    %c0_51 = arith.constant 0 : index
    %75 = vector.load %arg7[%c1_49, %c0_50, %c0_51] : memref<3x80x128xbf16, #tpu.memory_space<vmem>>, vector<1x80x128xbf16>
    %76 = vector.shape_cast %75 : vector<1x80x128xbf16> to vector<80x128xbf16>
    %cst_52 = arith.constant dense<0.000000e+00> : vector<24x128xf32>
    %77 = tpu.matmul %74, %76, %cst_52 {dimension_numbers = #tpu.dot_dimension_numbers<[1], [0], [0], [1], [0, 0, 1, 1], [], []>} : vector<24x80xbf16>, vector<80x128xbf16>, vector<24x128xf32> -> vector<24x128xf32>
    %78 = arith.addf %72, %77 : vector<24x128xf32>
    %79 = vector.extract_strided_slice %66 {offsets = [2, 0], sizes = [24, 80], strides = [1, 1]} : vector<26x80xf32> to vector<24x80xf32>
    %80 = arith.truncf %79 : vector<24x80xf32> to vector<24x80xbf16>
    %c2_53 = arith.constant 2 : index
    %c0_54 = arith.constant 0 : index
    %c0_55 = arith.constant 0 : index
    %81 = vector.load %arg7[%c2_53, %c0_54, %c0_55] : memref<3x80x128xbf16, #tpu.memory_space<vmem>>, vector<1x80x128xbf16>
    %82 = vector.shape_cast %81 : vector<1x80x128xbf16> to vector<80x128xbf16>
    %cst_56 = arith.constant dense<0.000000e+00> : vector<24x128xf32>
    %83 = tpu.matmul %80, %82, %cst_56 {dimension_numbers = #tpu.dot_dimension_numbers<[1], [0], [0], [1], [0, 0, 1, 1], [], []>} : vector<24x80xbf16>, vector<80x128xbf16>, vector<24x128xf32> -> vector<24x128xf32>
    %84 = arith.addf %78, %83 : vector<24x128xf32>
    %85 = vector.broadcast %67 : vector<1x128xf32> to vector<24x128xf32>
    %86 = arith.addf %84, %85 : vector<24x128xf32>
    %cst_57 = arith.constant 0.000000e+00 : f32
    %87 = vector.broadcast %cst_57 : f32 to vector<24x128xf32>
    %88 = arith.maximumf %86, %87 : vector<24x128xf32>
    %89 = vector.extract_strided_slice %88 {offsets = [0, 0], sizes = [1, 128], strides = [1, 1]} : vector<24x128xf32> to vector<1x128xf32>
    %90 = vector.extract_strided_slice %88 {offsets = [1, 0], sizes = [1, 128], strides = [1, 1]} : vector<24x128xf32> to vector<1x128xf32>
    %91 = vector.extract_strided_slice %88 {offsets = [2, 0], sizes = [1, 128], strides = [1, 1]} : vector<24x128xf32> to vector<1x128xf32>
    %92 = vector.extract_strided_slice %88 {offsets = [3, 0], sizes = [1, 128], strides = [1, 1]} : vector<24x128xf32> to vector<1x128xf32>
    %93 = vector.extract_strided_slice %88 {offsets = [4, 0], sizes = [1, 128], strides = [1, 1]} : vector<24x128xf32> to vector<1x128xf32>
    %94 = vector.extract_strided_slice %88 {offsets = [5, 0], sizes = [1, 128], strides = [1, 1]} : vector<24x128xf32> to vector<1x128xf32>
    %95 = vector.extract_strided_slice %88 {offsets = [6, 0], sizes = [1, 128], strides = [1, 1]} : vector<24x128xf32> to vector<1x128xf32>
    %96 = vector.extract_strided_slice %88 {offsets = [7, 0], sizes = [1, 128], strides = [1, 1]} : vector<24x128xf32> to vector<1x128xf32>
    %97 = tpu.concatenate %89, %90, %91, %92, %93, %94, %95, %96 in 1 : vector<1x128xf32>, vector<1x128xf32>, vector<1x128xf32>, vector<1x128xf32>, vector<1x128xf32>, vector<1x128xf32>, vector<1x128xf32>, vector<1x128xf32> -> vector<1x1024xf32>
    %98 = vector.extract_strided_slice %88 {offsets = [16, 0], sizes = [1, 128], strides = [1, 1]} : vector<24x128xf32> to vector<1x128xf32>
    %99 = vector.extract_strided_slice %88 {offsets = [17, 0], sizes = [1, 128], strides = [1, 1]} : vector<24x128xf32> to vector<1x128xf32>
    %100 = vector.extract_strided_slice %88 {offsets = [18, 0], sizes = [1, 128], strides = [1, 1]} : vector<24x128xf32> to vector<1x128xf32>
    %101 = vector.extract_strided_slice %88 {offsets = [19, 0], sizes = [1, 128], strides = [1, 1]} : vector<24x128xf32> to vector<1x128xf32>
    %102 = vector.extract_strided_slice %88 {offsets = [20, 0], sizes = [1, 128], strides = [1, 1]} : vector<24x128xf32> to vector<1x128xf32>
    %103 = vector.extract_strided_slice %88 {offsets = [21, 0], sizes = [1, 128], strides = [1, 1]} : vector<24x128xf32> to vector<1x128xf32>
    %104 = vector.extract_strided_slice %88 {offsets = [22, 0], sizes = [1, 128], strides = [1, 1]} : vector<24x128xf32> to vector<1x128xf32>
    %105 = vector.extract_strided_slice %88 {offsets = [23, 0], sizes = [1, 128], strides = [1, 1]} : vector<24x128xf32> to vector<1x128xf32>
    %106 = tpu.concatenate %98, %99, %100, %101, %102, %103, %104, %105 in 1 : vector<1x128xf32>, vector<1x128xf32>, vector<1x128xf32>, vector<1x128xf32>, vector<1x128xf32>, vector<1x128xf32>, vector<1x128xf32>, vector<1x128xf32> -> vector<1x1024xf32>
    %107 = tpu.concatenate %97, %106 in 0 : vector<1x1024xf32>, vector<1x1024xf32> -> vector<2x1024xf32>
    %108 = arith.truncf %107 : vector<2x1024xf32> to vector<2x1024xbf16>
    %c0_58 = arith.constant 0 : index
    %c0_59 = arith.constant 0 : index
    %109 = vector.load %arg9[%c0_58, %c0_59] : memref<1024x64xbf16, #tpu.memory_space<vmem>>, vector<1024x64xbf16>
    %cst_60 = arith.constant dense<0.000000e+00> : vector<2x64xf32>
    %110 = tpu.matmul %108, %109, %cst_60 {dimension_numbers = #tpu.dot_dimension_numbers<[1], [0], [0], [1], [0, 0, 1, 1], [], []>} : vector<2x1024xbf16>, vector<1024x64xbf16>, vector<2x64xf32> -> vector<2x64xf32>
    %c0_61 = arith.constant 0 : index
    %c0_62 = arith.constant 0 : index
    %111 = vector.load %arg10[%c0_61, %c0_62] : memref<1x64xf32, #tpu.memory_space<vmem>>, vector<1x64xf32>
    %112 = vector.broadcast %111 : vector<1x64xf32> to vector<2x64xf32>
    %113 = arith.addf %110, %112 : vector<2x64xf32>
    %cst_63 = arith.constant 0.000000e+00 : f32
    %114 = vector.broadcast %cst_63 : f32 to vector<2x64xf32>
    %115 = arith.maximumf %113, %114 : vector<2x64xf32>
    %116 = tpu.iota {dimensions = array<i32: 1>} : vector<2x64xi32>
    %c32_i32 = arith.constant 32 : i32
    %117 = vector.broadcast %c32_i32 : i32 to vector<2x64xi32>
    %118 = arith.cmpi sge, %116, %117 : vector<2x64xi32>
    %cst_64 = arith.constant 5.000000e-01 : f32
    %119 = vector.broadcast %cst_64 : f32 to vector<2x64xf32>
    %120 = arith.mulf %115, %119 : vector<2x64xf32>
    %121 = math.exp %120 : vector<2x64xf32>
    %122 = arith.select %118, %121, %115 : vector<2x64xi1>, vector<2x64xf32>
    %c0_65 = arith.constant 0 : index
    %c0_66 = arith.constant 0 : index
    %123 = vector.load %arg11[%c0_65, %c0_66] : memref<2x64xf32, #tpu.memory_space<vmem>>, vector<2x64xf32>
    tpu.vector_store %arg11[%c0_65, %c0_66], %122 {strides = array<i32>} : memref<2x64xf32, #tpu.memory_space<vmem>>, vector<2x64xf32>,
    return
  }
}

</mosaic_0001>

<bundles_post_ra>
// kernel: encoder_forward.1
= control target key start
LH: loop header
LB: loop body
LE: loop exit
PB: predicated region body
PF: predicated region fallthrough
CT: control target
= control target key end

     0   :  { %vm63_vm0 = vsmask.f32 7424  ;;  %vm103_vm1 = vcmask 523264   ;;  %vm247_vm2 = vcmask 1046528   ;;  %vm437_vm3 = vcmask 916480   ;;  %s3426_s1 = inlined_call_operand.vmem [shape: bf16[3,64,112], index: 1, kind: input, shape index: {}]   ;;  %s3427_s0 = inlined_call_operand.vmem [shape: f32[32,64], index: 0, kind: input, shape index: {}]   ;;  %s3428_s3 = inlined_call_operand.vmem [shape: bf16[3,112,96], index: 3, kind: input, shape index: {}]   ;;  %s3429_s5 = inlined_call_operand.vmem [shape: bf16[3,96,80], index: 5, kind: input, shape index: {}]   ;;  %s3430_s2 = inlined_call_operand.vmem [shape: f32[1,112], index: 2, kind: input, shape index: {}]   ;;  %s3431_s7 = inlined_call_operand.vmem [shape: bf16[3,80,128], index: 7, kind: input, shape index: {}]   ;;  %s3432_s4 = inlined_call_operand.vmem [shape: f32[1,96], index: 4, kind: input, shape index: {}]   ;;  %s3433_s6 = inlined_call_operand.vmem [shape: f32[1,80], index: 6, kind: input, shape index: {}]   ;;  %s3434_s9 = inlined_call_operand.vmem [shape: bf16[1024,64], index: 9, kind: input, shape index: {}]   ;;  %s3435_s8 = inlined_call_operand.vmem [shape: f32[1,128], index: 8, kind: input, shape index: {}]   ;;  %s3436_s10 = inlined_call_operand.vmem [shape: f32[1,64], index: 10, kind: input, shape index: {}]   ;;  %s3437_s11 = inlined_call_operand.vmem [shape: f32[2,64], index: 11, kind: output, shape index: {}]  }
   0x1   :  { %v2774_v0 = vld [vmem:[%s3426_s1 + $0x20] sm:$0xff]   ;;  %v2775_v1 = vld [vmem:[%s3426_s1 + $0x28] sm:$0xff]   ;;  %v2776_v2 = vld [vmem:[%s3426_s1 + $0x30] sm:$0xff]   ;;  %vm802_vm4 = vcmask 785408   ;;  %vm1144_vm5 = vcmask 654336   ;;  %vm1429_vm6 = vcmask 1040384  }
   0x2   :  { %2570 = vmatprep.subr.bf16.mxu0 %v2774_v0  ;;  %v39_v3 = vld [vmem:[%s3427_s0] sm:$0xff]  ;;  %v40_v4 = vld [vmem:[%s3427_s0 + $0x8] sm:$0xff]  ;;  %v41_v5 = vld [vmem:[%s3427_s0 + $0x10] sm:$0xff]  ;;  %vm2133_vm8 = vcmask 517120  }
   0x3   :  { %2571 = vmatpush3.bf16.msra.mxu0 %v2774_v0  ;;  %v42_v6 = vld [vmem:[%s3427_s0 + $0x18] sm:$0xff]  ;;  %v44_v7 = vpack.c.bf16 %v40_v4, %v39_v3  ;;  %v2778_v17 = vld [vmem:[%s3426_s1] sm:$0xff]   ;;  %v2779_v22 = vld [vmem:[%s3426_s1 + $0x8] sm:$0xff]  }
   0x4   :  { %2572 = vmatprep.subr.bf16.mxu0 %v2775_v1  ;;  %v45_v8 = vpack.c.bf16 %v42_v6, %v41_v5  ;;  %v2777_v11 = vld [vmem:[%s3426_s1 + $0x38] sm:$0xff]   ;;  %v2787_v21 = vld [vmem:[%s3428_s3 + $0x40] sm:$0xff]   ;;  %v2788_v25 = vld [vmem:[%s3428_s3 + $0x48] sm:$0xff]  }
   0x5   :  { %v65_v9 = vshrl.u32 %v44_v7, 16  ;;  %v67_v10 = vshll.u32 %v44_v7, 16  ;;  %v2786_v20 = vld [vmem:[%s3428_s3 + $0x38] sm:$0xff]   ;;  %v248_v23 = vrot.slane %v44_v7, 1  ;;  %v2780_v26 = vld [vmem:[%s3426_s1 + $0x10] sm:$0xff]   ;;  %v2782_v28 = vld [vmem:[%s3426_s1 + $0x40] sm:$0xff]  }
   0x6   :  { %v72_v12 = vshll.u32 %v45_v8, 16  ;;  %v76_v15 = vshrl.u32 %v45_v8, 16  ;;  %v249_v24 = vrot.slane %v45_v8, 1  ;;  %2606 = vmatprep.subr.bf16.mxu1 %v2786_v20  ;;  %v2781_v27 = vld [vmem:[%s3426_s1 + $0x18] sm:$0xff]   ;;  %v2783_v29 = vld [vmem:[%s3426_s1 + $0x48] sm:$0xff]   ;;  %v2784_v31 = vld [vmem:[%s3426_s1 + $0x50] sm:$0xff]  }
   0x7   :  { %2573 = vmatpush3.bf16.msra.mxu0 %v2775_v1  ;;  %v69_v13 = vrot.slane %v67_v10, 1  ;;  %2607 = vmatpush3.bf16.msra.mxu1 %v2786_v20  ;;  %v2785_v32 = vld [vmem:[%s3426_s1 + $0x58] sm:$0xff]   ;;  %v2789_v33 = vld [vmem:[%s3428_s3 + $0x50] sm:$0xff]   ;;  %v2791_v35 = vld [vmem:[%s3428_s3 + $0x60] sm:$0xff]  }
   0x8   :  { %2574 = vmatprep.subr.bf16.mxu0 %v2776_v2  ;;  %v74_v14 = vrot.slane %v72_v12, 1  ;;  %2608 = vmatprep.subr.bf16.mxu1 %v2787_v21  ;;  %v250_v30 = vsel %vm247_vm2, %v248_v23, %v249_v24  ;;  %v2790_v34 = vld [vmem:[%s3428_s3 + $0x58] sm:$0xff]   ;;  %v2792_v36 = vld [vmem:[%s3428_s3 + $0x68] sm:$0xff]   ;;  %v2793_v37 = vld [vmem:[%s3428_s3] sm:$0xff]  }
   0x9   :  { %v70_v16 = vor.u32 %v69_v13, %v65_v9  ;;  %v2807_v38 = vld [vmem:[%s3429_s5 + $0x30] sm:$0xff]   ;;  %v2808_v39 = vld [vmem:[%s3429_s5 + $0x38] sm:$0xff]   ;;  %v2173_v40 = vld [vmem:[%s3430_s2] ss:$0 sm:$0xff] }
   0xa   :  { %v78_v19 = vor.u32 %v76_v15, %v74_v14  ;;  %v2794_v3 = vld [vmem:[%s3428_s3 + $0x8] sm:$0xff]   ;;  %v2795_v4 = vld [vmem:[%s3428_s3 + $0x10] sm:$0xff]   ;;  %v2796_v5 = vld [vmem:[%s3428_s3 + $0x18] sm:$0xff]  }
   0xb   :  { %2575 = vmatpush3.bf16.msra.mxu0 %v2776_v2  ;;  %v75_v18 = vsel %vm63_vm0, %v70_v16, %v74_v14  ;;  %2609 = vmatpush3.bf16.msra.mxu1 %v2787_v21  ;;  %v2797_v6 = vld [vmem:[%s3428_s3 + $0x20] sm:$0xff]   ;;  %v2800_v9 = vld [vmem:[%s3428_s3 + $0x70] sm:$0xff]   ;;  %v2801_v10 = vld [vmem:[%s3428_s3 + $0x78] sm:$0xff]  }
   0xc   :  { %2576 = vmatprep.subr.bf16.mxu0 %v2777_v11  ;;  %2578 = vmatprep.mubr.msk.bf16.mxu0 %vm103_vm1, %v75_v18  ;;  %v2803_v12 = vld [vmem:[%s3428_s3 + $0x88] sm:$0xff]   ;;  %v2804_v13 = vld [vmem:[%s3428_s3 + $0x90] sm:$0xff]   ;;  %v2805_v14 = vld [vmem:[%s3428_s3 + $0x98] sm:$0xff]  }
   0xd   :  { %2610 = vmatprep.subr.bf16.mxu1 %v2788_v25  ;;  %v2806_v15 = vld [vmem:[%s3428_s3 + $0xa0] sm:$0xff]   ;;  %v2811_v18 = vld [vmem:[%s3429_s5 + $0x50] sm:$0xff]   ;;  %v2826_v21 = vld [vmem:[%s3431_s7 + $0x28] sm:$0xff]  }
   0xe   :  { %v2809_v16 = vld [vmem:[%s3429_s5 + $0x40] sm:$0xff]  }
   0xf   :  { %2577 = vmatpush3.bf16.msra.mxu0 %v2777_v11  ;;  %2611 = vmatpush3.bf16.msra.mxu1 %v2788_v25  ;;  %v2802_v11 = vld [vmem:[%s3428_s3 + $0x80] sm:$0xff]  }
  0x10   :  { %2582 = vmatprep.subr.bf16.mxu0 %v2778_v17  ;;  %2612 = vmatprep.subr.bf16.mxu1 %v2789_v33  ;;  %v2813_v20 = vld [vmem:[%s3429_s5] sm:$0xff]  }
  0x12   :  { %2579 = vmatmul.mubr.msk.bf16.vlgmr.msra.gmra.mrb[0].mxu0 %vm103_vm1, %v78_v19  ;;  %v2812_v19 = vld [vmem:[%s3429_s5 + $0x58] sm:$0xff]  }
  0x13   :  { %2583 = vmatpush3.bf16.msra.mxu0 %v2778_v17  ;;  %2590 = vmatprep.mubr.msk.bf16.mxu0 %vm103_vm1, %v44_v7  ;;  %v2798_v7 = vld [vmem:[%s3428_s3 + $0x28] sm:$0xff]  }
  0x14   :  { %2584 = vmatprep.subr.bf16.mxu0 %v2779_v22  ;;  %2613 = vmatpush3.bf16.msra.mxu1 %v2789_v33  ;;  %v2810_v17 = vld [vmem:[%s3429_s5 + $0x48] sm:$0xff]  }
  0x15   :  { %2614 = vmatprep.subr.bf16.mxu1 %v2790_v34 }
  0x17   :  { %2585 = vmatpush3.bf16.msra.mxu0 %v2779_v22  ;;  %v2229_v22 = vld [vmem:[%s3432_s4] ss:$0 sm:$0xff] }
  0x18   :  { %2586 = vmatprep.subr.bf16.mxu0 %v2780_v26  ;;  %2615 = vmatpush3.bf16.msra.mxu1 %v2790_v34 }
  0x19   :  { %2616 = vmatprep.subr.bf16.mxu1 %v2791_v35 }
  0x1b   :  { %2587 = vmatpush3.bf16.msra.mxu0 %v2780_v26 }
  0x1c   :  { %2588 = vmatprep.subr.bf16.mxu0 %v2781_v27  ;;  %2617 = vmatpush3.bf16.msra.mxu1 %v2791_v35 }
  0x1d   :  { %2618 = vmatprep.subr.bf16.mxu1 %v2792_v36 }
  0x1f   :  { %2589 = vmatpush3.bf16.msra.mxu0 %v2781_v27 }
  0x20   :  { %2594 = vmatprep.subr.bf16.mxu0 %v2782_v28  ;;  %2619 = vmatpush3.bf16.msra.mxu1 %v2792_v36 }
  0x21   :  { %2624 = vmatprep.subr.bf16.mxu1 %v2793_v37 }
  0x22   :  { %2591 = vmatmul.mubr.msk.bf16.vlgmr.msra.gmra.mrb[0].mxu0 %vm103_vm1, %v45_v8  ;;  %v2799_v8 = vld [vmem:[%s3428_s3 + $0x30] sm:$0xff]  }
  0x23   :  { %2595 = vmatpush3.bf16.msra.mxu0 %v2782_v28  ;;  %2602 = vmatprep.mubr.msk.bf16.mxu0 %vm103_vm1, %v250_v30 }
  0x24   :  { %2596 = vmatprep.subr.bf16.mxu0 %v2783_v29 }
  0x27   :  { %2597 = vmatpush3.bf16.msra.mxu0 %v2783_v29 }
  0x28   :  { %2598 = vmatprep.subr.bf16.mxu0 %v2784_v31 }
  0x2b   :  { %2599 = vmatpush3.bf16.msra.mxu0 %v2784_v31 }
  0x2c   :  { %2600 = vmatprep.subr.bf16.mxu0 %v2785_v32 }
  0x2f   :  { %2601 = vmatpush3.bf16.msra.mxu0 %v2785_v32 }
  0x30   :  { %2660 = vmatprep.subr.bf16.mxu0 %v2807_v38 }
  0x32   :  { %2603 = vmatmul.mubr.msk.bf16.vlgmr.msra.gmra.mrb[0].mxu0 %vm103_vm1, %v249_v24 }
  0x33   :  { %2661 = vmatpush3.bf16.msra.mxu0 %v2807_v38 }
  0x34   :  { %2662 = vmatprep.subr.bf16.mxu0 %v2808_v39 }
  0x37   :  { %2663 = vmatpush3.bf16.msra.mxu0 %v2808_v39 }
  0x38   :  { %2664 = vmatprep.subr.bf16.mxu0 %v2809_v16 }
  0x3b   :  { %2665 = vmatpush3.bf16.msra.mxu0 %v2809_v16 }
  0x3c   :  { %2666 = vmatprep.subr.bf16.mxu0 %v2810_v17 }
  0x3f   :  { %2667 = vmatpush3.bf16.msra.mxu0 %v2810_v17 }
  0x40   :  { %2668 = vmatprep.subr.bf16.mxu0 %v2811_v18 }
  0x43   :  { %2669 = vmatpush3.bf16.msra.mxu0 %v2811_v18 }
  0x44   :  { %2670 = vmatprep.subr.bf16.mxu0 %v2812_v19 }
  0x47   :  { %2671 = vmatpush3.bf16.msra.mxu0 %v2812_v19 }
  0x48   :  { %2676 = vmatprep.subr.bf16.mxu0 %v2813_v20 }
 0x105   :  { %v2604_v41 = vpop.f32.mrb[0].mxu0 }
 0x106   :  { %v342_v42 = vadd.f32 %v2604_v41, %v2173_v40  ;;  %v315_v43 = vpop.f32.mrb[1].mxu0 }
 0x107   :  { %v340_v44 = vadd.f32 %v2173_v40, %v315_v43  ;;  %v2605_v45 = vpop.f32.mrb[2].mxu0 }
 0x108   :  { %v343_v46 = vadd.f32 %v2605_v45, %v2173_v40  ;;  %v318_v47 = vpop.f32.mrb[3].mxu0  ;;  %v346_v49 = vmax.f32 %v342_v42, 0.0 }
 0x109   :  { %v341_v48 = vadd.f32 %v2173_v40, %v318_v47  ;;  %v344_v51 = vmax.f32 %v340_v44, 0.0 }
 0x10a   :  { %v347_v50 = vmax.f32 %v343_v46, 0.0 }
 0x10b   :  { %v345_v52 = vmax.f32 %v341_v48, 0.0 }
 0x10c   :  { %v350_v53 = vpack.c.bf16 %v347_v50, %v346_v49  ;;  %v2814_v49 = vld [vmem:[%s3429_s5 + $0x8] sm:$0xff]   ;;  %v2815_v50 = vld [vmem:[%s3429_s5 + $0x10] sm:$0xff]  }
 0x10d   :  { %v349_v54 = vpack.c.bf16 %v345_v52, %v344_v51  ;;  %v2816_v51 = vld [vmem:[%s3429_s5 + $0x18] sm:$0xff]   ;;  %v2817_v52 = vld [vmem:[%s3429_s5 + $0x20] sm:$0xff]  }
 0x10e   :  { %v388_v55 = vshll.u32 %v350_v53, 16  ;;  %v606_v56 = vrot.slane %v350_v53, 1  ;;  %v392_v0 = vshrl.u32 %v350_v53, 16 }
 0x10f   :  { %v383_v57 = vshll.u32 %v349_v54, 16  ;;  %v605_v58 = vrot.slane %v349_v54, 1  ;;  %v381_v59 = vshrl.u32 %v349_v54, 16 }
 0x110   :  { %v390_v61 = vrot.slane %v388_v55, 1  ;;  %v2820_v55 = vld [vmem:[%s3429_s5 + $0x68] sm:$0xff]  }
 0x111   :  { %v385_v60 = vrot.slane %v383_v57, 1  ;;  %v607_v62 = vsel %vm247_vm2, %v605_v58, %v606_v56  ;;  %v2822_v57 = vld [vmem:[%s3429_s5 + $0x78] sm:$0xff]   ;;  %v2823_v58 = vld [vmem:[%s3429_s5 + $0x80] sm:$0xff]  }
 0x112   :  { %v394_v2 = vor.u32 %v392_v0, %v390_v61  ;;  %v2830_v0 = vld [vmem:[%s3431_s7 + $0x38] sm:$0xff]  }
 0x113   :  { %v386_v63 = vor.u32 %v385_v60, %v381_v59  ;;  %v2824_v59 = vld [vmem:[%s3429_s5 + $0x88] sm:$0xff]   ;;  %v2825_v60 = vld [vmem:[%s3431_s7 + $0x50] sm:$0xff]  }
 0x115   :  { %v391_v1 = vsel %vm63_vm0, %v386_v63, %v390_v61  ;;  %v2827_v61 = vld [vmem:[%s3431_s7 + $0x58] sm:$0xff]   ;;  %v2829_v63 = vld [vmem:[%s3431_s7 + $0x60] sm:$0xff]  }
 0x116   :  { %2620 = vmatprep.mubr.msk.bf16.mxu1 %vm437_vm3, %v391_v1  ;;  %v2831_v1 = vld [vmem:[%s3431_s7 + $0x68] sm:$0xff]  }
 0x117   :  { %2621 = vmatmul.mubr.msk.bf16.vlgmr.msra.gmra.mrb[0].mxu1 %vm437_vm3, %v394_v2  ;;  %v2832_v2 = vld [vmem:[%s3431_s7 + $0x40] sm:$0xff]  }
 0x118   :  { %2625 = vmatpush3.bf16.msra.mxu1 %v2793_v37  ;;  %2638 = vmatprep.mubr.msk.bf16.mxu1 %vm437_vm3, %v349_v54  ;;  %v2819_v54 = vld [vmem:[%s3429_s5 + $0x60] sm:$0xff]  }
 0x119   :  { %2626 = vmatprep.subr.bf16.mxu1 %v2794_v3 }
 0x11c   :  { %2627 = vmatpush3.bf16.msra.mxu1 %v2794_v3  ;;  %v2833_v3 = vld [vmem:[%s3431_s7 + $0x70] sm:$0xff]  }
 0x11d   :  { %2628 = vmatprep.subr.bf16.mxu1 %v2795_v4 }
 0x120   :  { %2629 = vmatpush3.bf16.msra.mxu1 %v2795_v4  ;;  %v2834_v4 = vld [vmem:[%s3431_s7 + $0x48] sm:$0xff]  }
 0x121   :  { %2630 = vmatprep.subr.bf16.mxu1 %v2796_v5 }
 0x124   :  { %2631 = vmatpush3.bf16.msra.mxu1 %v2796_v5  ;;  %v2835_v5 = vld [vmem:[%s3431_s7] sm:$0xff]  }
 0x125   :  { %2632 = vmatprep.subr.bf16.mxu1 %v2797_v6 }
 0x128   :  { %2633 = vmatpush3.bf16.msra.mxu1 %v2797_v6  ;;  %v2278_v6 = vld [vmem:[%s3433_s6] ss:$0 sm:$0xff] }
 0x129   :  { %2634 = vmatprep.subr.bf16.mxu1 %v2798_v7 }
 0x12c   :  { %2635 = vmatpush3.bf16.msra.mxu1 %v2798_v7 }
 0x12d   :  { %2636 = vmatprep.subr.bf16.mxu1 %v2799_v8 }
 0x130   :  { %2637 = vmatpush3.bf16.msra.mxu1 %v2799_v8 }
 0x131   :  { %2642 = vmatprep.subr.bf16.mxu1 %v2800_v9 }
 0x133   :  { %2639 = vmatmul.mubr.msk.bf16.vlgmr.msra.gmra.mrb[0].mxu1 %vm437_vm3, %v350_v53  ;;  %v2818_v53 = vld [vmem:[%s3429_s5 + $0x28] sm:$0xff]  }
 0x134   :  { %2643 = vmatpush3.bf16.msra.mxu1 %v2800_v9  ;;  %2656 = vmatprep.mubr.msk.bf16.mxu1 %vm437_vm3, %v607_v62  ;;  %v2828_v62 = vld [vmem:[%s3431_s7 + $0x30] sm:$0xff]  }
 0x135   :  { %2644 = vmatprep.subr.bf16.mxu1 %v2801_v10 }
 0x138   :  { %2645 = vmatpush3.bf16.msra.mxu1 %v2801_v10 }
 0x139   :  { %2646 = vmatprep.subr.bf16.mxu1 %v2802_v11 }
 0x13c   :  { %2647 = vmatpush3.bf16.msra.mxu1 %v2802_v11 }
 0x13d   :  { %2648 = vmatprep.subr.bf16.mxu1 %v2803_v12 }
 0x140   :  { %2649 = vmatpush3.bf16.msra.mxu1 %v2803_v12 }
 0x141   :  { %2650 = vmatprep.subr.bf16.mxu1 %v2804_v13 }
 0x144   :  { %2651 = vmatpush3.bf16.msra.mxu1 %v2804_v13 }
 0x145   :  { %2652 = vmatprep.subr.bf16.mxu1 %v2805_v14 }
 0x148   :  { %2653 = vmatpush3.bf16.msra.mxu1 %v2805_v14 }
 0x149   :  { %2654 = vmatprep.subr.bf16.mxu1 %v2806_v15 }
 0x14c   :  { %2655 = vmatpush3.bf16.msra.mxu1 %v2806_v15 }
 0x14d   :  { %2708 = vmatprep.subr.bf16.mxu1 %v2826_v21 }
 0x14f   :  { %2657 = vmatmul.mubr.msk.bf16.vlgmr.msra.gmra.mrb[0].mxu1 %vm437_vm3, %v606_v56  ;;  %v2821_v56 = vld [vmem:[%s3429_s5 + $0x70] sm:$0xff]  }
 0x150   :  { %2709 = vmatpush3.bf16.msra.mxu1 %v2826_v21 }
 0x151   :  { %2710 = vmatprep.subr.bf16.mxu1 %v2828_v62 }
 0x154   :  { %2711 = vmatpush3.bf16.msra.mxu1 %v2828_v62  ;;  %v2864_v62 = vld [vmem:[%s3434_s9 + $0x70] sm:$0xff]  }
 0x155   :  { %2712 = vmatprep.subr.bf16.mxu1 %v2830_v0 }
 0x158   :  { %2713 = vmatpush3.bf16.msra.mxu1 %v2830_v0  ;;  %v2866_v0 = vld [vmem:[%s3434_s9 + $0x30] sm:$0xff]  }
 0x159   :  { %2714 = vmatprep.subr.bf16.mxu1 %v2832_v2 }
 0x15c   :  { %2715 = vmatpush3.bf16.msra.mxu1 %v2832_v2  ;;  %v2868_v2 = vld [vmem:[%s3434_s9 + $0x78] sm:$0xff]  }
 0x15d   :  { %2716 = vmatprep.subr.bf16.mxu1 %v2834_v4 }
 0x160   :  { %2717 = vmatpush3.bf16.msra.mxu1 %v2834_v4  ;;  %v2870_v4 = vld [vmem:[%s3434_s9 + $0x38] sm:$0xff]  }
 0x161   :  { %2722 = vmatprep.subr.bf16.mxu1 %v2835_v5 }
 0x222   :  { %v2658_v23 = vpop.f32.mrb[0].mxu1 }
 0x223   :  { %v717_v24 = vadd.f32 %v2658_v23, %v2229_v22  ;;  %v690_v25 = vpop.f32.mrb[1].mxu1 }
 0x224   :  { %v715_v26 = vadd.f32 %v2229_v22, %v690_v25  ;;  %v2659_v27 = vpop.f32.mrb[2].mxu1 }
 0x225   :  { %v718_v28 = vadd.f32 %v2659_v27, %v2229_v22  ;;  %v693_v29 = vpop.f32.mrb[3].mxu1  ;;  %v721_v31 = vmax.f32 %v717_v24, 0.0 }
 0x226   :  { %v716_v30 = vadd.f32 %v2229_v22, %v693_v29  ;;  %v719_v33 = vmax.f32 %v715_v26, 0.0 }
 0x227   :  { %v722_v32 = vmax.f32 %v718_v28, 0.0 }
 0x228   :  { %v720_v34 = vmax.f32 %v716_v30, 0.0 }
 0x229   :  { %v725_v35 = vpack.c.bf16 %v722_v32, %v721_v31 }
 0x22a   :  { %v724_v36 = vpack.c.bf16 %v720_v34, %v719_v33  ;;  %v2836_v33 = vld [vmem:[%s3431_s7 + $0x8] sm:$0xff]   ;;  %v2837_v34 = vld [vmem:[%s3431_s7 + $0x10] sm:$0xff]  }
 0x22b   :  { %v759_v37 = vshll.u32 %v725_v35, 16  ;;  %v963_v38 = vrot.slane %v725_v35, 1  ;;  %v763_v45 = vshrl.u32 %v725_v35, 16 }
 0x22c   :  { %v754_v39 = vshll.u32 %v724_v36, 16  ;;  %v962_v40 = vrot.slane %v724_v36, 1  ;;  %v752_v41 = vshrl.u32 %v724_v36, 16 }
 0x22d   :  { %v761_v43 = vrot.slane %v759_v37, 1 }
 0x22e   :  { %v756_v42 = vrot.slane %v754_v39, 1  ;;  %v964_v44 = vsel %vm247_vm2, %v962_v40, %v963_v38  ;;  %v2841_v39 = vld [vmem:[%s3434_s9 + $0xc0] sm:$0xff]  }
 0x22f   :  { %v765_v48 = vor.u32 %v763_v45, %v761_v43  ;;  %v2842_v40 = vld [vmem:[%s3434_s9] sm:$0xff]   ;;  %v2847_v45 = vld [vmem:[%s3434_s9 + $0x88] sm:$0xff]  }
 0x230   :  { %v757_v46 = vor.u32 %v756_v42, %v752_v41  ;;  %v2843_v41 = vld [vmem:[%s3434_s9 + $0x80] sm:$0xff]   ;;  %v2844_v42 = vld [vmem:[%s3434_s9 + $0x48] sm:$0xff]  }
 0x232   :  { %v762_v47 = vsel %vm63_vm0, %v757_v46, %v761_v43  ;;  %v2845_v43 = vld [vmem:[%s3434_s9 + $0xc8] sm:$0xff]   ;;  %v2848_v46 = vld [vmem:[%s3434_s9 + $0x50] sm:$0xff]  }
 0x233   :  { %2672 = vmatprep.mubr.msk.bf16.mxu0 %vm802_vm4, %v762_v47  ;;  %v2849_v47 = vld [vmem:[%s3434_s9 + $0xd0] sm:$0xff]  }
 0x234   :  { %2673 = vmatmul.mubr.msk.bf16.vlgmr.msra.gmra.mrb[4].mxu0 %vm802_vm4, %v765_v48  ;;  %v2850_v48 = vld [vmem:[%s3434_s9 + $0x10] sm:$0xff]  }
 0x235   :  { %2677 = vmatpush3.bf16.msra.mxu0 %v2813_v20  ;;  %2688 = vmatprep.mubr.msk.bf16.mxu0 %vm802_vm4, %v724_v36  ;;  %v2839_v36 = vld [vmem:[%s3431_s7 + $0x20] sm:$0xff]  }
 0x236   :  { %2678 = vmatprep.subr.bf16.mxu0 %v2814_v49 }
 0x239   :  { %2679 = vmatpush3.bf16.msra.mxu0 %v2814_v49  ;;  %v2851_v49 = vld [vmem:[%s3434_s9 + $0x90] sm:$0xff]  }
 0x23a   :  { %2680 = vmatprep.subr.bf16.mxu0 %v2815_v50 }
 0x23d   :  { %2681 = vmatpush3.bf16.msra.mxu0 %v2815_v50  ;;  %v2852_v50 = vld [vmem:[%s3434_s9 + $0x58] sm:$0xff]  }
 0x23e   :  { %2682 = vmatprep.subr.bf16.mxu0 %v2816_v51 }
 0x241   :  { %2683 = vmatpush3.bf16.msra.mxu0 %v2816_v51  ;;  %v2853_v51 = vld [vmem:[%s3434_s9 + $0xd8] sm:$0xff]  }
 0x242   :  { %2684 = vmatprep.subr.bf16.mxu0 %v2817_v52 }
 0x245   :  { %2685 = vmatpush3.bf16.msra.mxu0 %v2817_v52  ;;  %v2854_v52 = vld [vmem:[%s3434_s9 + $0x18] sm:$0xff]  }
 0x246   :  { %2686 = vmatprep.subr.bf16.mxu0 %v2818_v53 }
 0x249   :  { %2687 = vmatpush3.bf16.msra.mxu0 %v2818_v53  ;;  %v2855_v53 = vld [vmem:[%s3434_s9 + $0x98] sm:$0xff]  }
 0x24a   :  { %2692 = vmatprep.subr.bf16.mxu0 %v2819_v54 }
 0x24c   :  { %2689 = vmatmul.mubr.msk.bf16.vlgmr.msra.gmra.mrb[4].mxu0 %vm802_vm4, %v725_v35  ;;  %v2838_v35 = vld [vmem:[%s3431_s7 + $0x18] sm:$0xff]  }
 0x24d   :  { %2693 = vmatpush3.bf16.msra.mxu0 %v2819_v54  ;;  %2704 = vmatprep.mubr.msk.bf16.mxu0 %vm802_vm4, %v964_v44  ;;  %v2846_v44 = vld [vmem:[%s3434_s9 + $0x8] sm:$0xff]   ;;  %v2856_v54 = vld [vmem:[%s3434_s9 + $0x60] sm:$0xff]  }
 0x24e   :  { %2694 = vmatprep.subr.bf16.mxu0 %v2820_v55 }
 0x251   :  { %2695 = vmatpush3.bf16.msra.mxu0 %v2820_v55  ;;  %v2857_v55 = vld [vmem:[%s3434_s9 + $0xe0] sm:$0xff]  }
 0x252   :  { %2696 = vmatprep.subr.bf16.mxu0 %v2821_v56 }
 0x255   :  { %2697 = vmatpush3.bf16.msra.mxu0 %v2821_v56  ;;  %v2858_v56 = vld [vmem:[%s3434_s9 + $0x20] sm:$0xff]  }
 0x256   :  { %2698 = vmatprep.subr.bf16.mxu0 %v2822_v57 }
 0x259   :  { %2699 = vmatpush3.bf16.msra.mxu0 %v2822_v57  ;;  %v2859_v57 = vld [vmem:[%s3434_s9 + $0xa0] sm:$0xff]  }
 0x25a   :  { %2700 = vmatprep.subr.bf16.mxu0 %v2823_v58 }
 0x25d   :  { %2701 = vmatpush3.bf16.msra.mxu0 %v2823_v58  ;;  %v2860_v58 = vld [vmem:[%s3434_s9 + $0x68] sm:$0xff]  }
 0x25e   :  { %2702 = vmatprep.subr.bf16.mxu0 %v2824_v59 }
 0x261   :  { %2703 = vmatpush3.bf16.msra.mxu0 %v2824_v59  ;;  %v2861_v59 = vld [vmem:[%s3434_s9 + $0xe8] sm:$0xff]  }
 0x262   :  { %2736 = vmatprep.subr.bf16.mxu0 %v2825_v60 }
 0x264   :  { %2705 = vmatmul.mubr.msk.bf16.vlgmr.msra.gmra.mrb[4].mxu0 %vm802_vm4, %v963_v38  ;;  %v2840_v38 = vld [vmem:[%s3434_s9 + $0x40] sm:$0xff]  }
 0x265   :  { %2737 = vmatpush3.bf16.msra.mxu0 %v2825_v60  ;;  %v2862_v60 = vld [vmem:[%s3434_s9 + $0x28] sm:$0xff]  }
 0x266   :  { %2738 = vmatprep.subr.bf16.mxu0 %v2827_v61 }
 0x269   :  { %2739 = vmatpush3.bf16.msra.mxu0 %v2827_v61  ;;  %v2863_v61 = vld [vmem:[%s3434_s9 + $0xa8] sm:$0xff]  }
 0x26a   :  { %2740 = vmatprep.subr.bf16.mxu0 %v2829_v63 }
 0x26d   :  { %2741 = vmatpush3.bf16.msra.mxu0 %v2829_v63  ;;  %v2865_v63 = vld [vmem:[%s3434_s9 + $0xf0] sm:$0xff]  }
 0x26e   :  { %2742 = vmatprep.subr.bf16.mxu0 %v2831_v1 }
 0x271   :  { %2743 = vmatpush3.bf16.msra.mxu0 %v2831_v1  ;;  %v2867_v1 = vld [vmem:[%s3434_s9 + $0xb0] sm:$0xff]  }
 0x272   :  { %2744 = vmatprep.subr.bf16.mxu0 %v2833_v3 }
 0x275   :  { %2745 = vmatpush3.bf16.msra.mxu0 %v2833_v3  ;;  %v2869_v3 = vld [vmem:[%s3434_s9 + $0xf8] sm:$0xff]  }
 0x276   :  { %2504 = vmatprep.subr.bf16.mxu0 %v2841_v39 }
 0x337   :  { %v2706_v7 = vpop.f32.mrb[4].mxu0 }
 0x338   :  { %v1068_v8 = vadd.f32 %v2706_v7, %v2278_v6  ;;  %v1041_v9 = vpop.f32.mrb[5].mxu0  ;;  %v2873_v7 = vld [vmem:[%s3434_s9 + $0x1c0] sm:$0xff]  }
 0x339   :  { %v1066_v10 = vadd.f32 %v2278_v6, %v1041_v9  ;;  %v2707_v11 = vpop.f32.mrb[6].mxu0 }
 0x33a   :  { %v1069_v12 = vadd.f32 %v2707_v11, %v2278_v6  ;;  %v1044_v13 = vpop.f32.mrb[7].mxu0  ;;  %v1072_v15 = vmax.f32 %v1068_v8, 0.0 }
 0x33b   :  { %v1067_v14 = vadd.f32 %v2278_v6, %v1044_v13  ;;  %v1070_v17 = vmax.f32 %v1066_v10, 0.0  ;;  %v2872_v6 = vld [vmem:[%s3434_s9 + $0x140] sm:$0xff]  }
 0x33c   :  { %v1073_v16 = vmax.f32 %v1069_v12, 0.0  ;;  %v1076_v37 = vpack.c.bf16 %v1072_v15, %v1072_v15 }
 0x33d   :  { %v1071_v18 = vmax.f32 %v1067_v14, 0.0 }
 0x33e   :  { %v1087_v19 = vpack.c.bf16 %v1073_v16, %v1072_v15 }
 0x33f   :  { %v1075_v20 = vpack.c.bf16 %v1071_v18, %v1070_v17 }
 0x340   :  { %v1107_v21 = vshll.u32 %v1087_v19, 16  ;;  %v1294_v22 = vrot.slane %v1087_v19, 1  ;;  %v1111_v29 = vshrl.u32 %v1087_v19, 16  ;;  %v2320_v19 = vld [vmem:[%s3435_s8] ss:$0 sm:$0xff] }
 0x341   :  { %v1293_v23 = vrot.slane %v1075_v20, 1  ;;  %v1102_v24 = vshll.u32 %v1075_v20, 16  ;;  %v1100_v26 = vshrl.u32 %v1075_v20, 16 }
 0x342   :  { %v1109_v28 = vrot.slane %v1107_v21, 1 }
 0x343   :  { %v1295_v25 = vsel %vm247_vm2, %v1293_v23, %v1294_v22  ;;  %v1104_v27 = vrot.slane %v1102_v24, 1 }
 0x344   :  { %2746 = vmatprep.mubr.msk.bf16.mxu0 %vm1144_vm5, %v1295_v25  ;;  %v1113_v32 = vor.u32 %v1111_v29, %v1109_v28 }
 0x345   :  { %2747 = vmatmul.mubr.msk.bf16.vlgmr.msra.gmra.mrb[8].mxu0 %vm1144_vm5, %v1294_v22  ;;  %v1105_v30 = vor.u32 %v1104_v27, %v1100_v26 }
 0x346   :  { %2505 = vmatpush3.bf16.msra.mxu0 %v2843_v41 }
 0x347   :  { %v1110_v31 = vsel %vm63_vm0, %v1105_v30, %v1109_v28  ;;  %2506 = vmatprep.subr.bf16.mxu0 %v2845_v43 }
 0x348   :  { %2718 = vmatprep.mubr.msk.bf16.mxu1 %vm1144_vm5, %v1110_v31 }
 0x349   :  { %2719 = vmatmul.mubr.msk.bf16.vlgmr.msra.gmra.mrb[4].mxu1 %vm1144_vm5, %v1113_v32 }
 0x34a   :  { %2723 = vmatpush3.bf16.msra.mxu1 %v2835_v5  ;;  %2732 = vmatprep.mubr.msk.bf16.mxu1 %vm1144_vm5, %v1075_v20  ;;  %v2871_v5 = vld [vmem:[%s3434_s9 + $0xb8] sm:$0xff]  }
 0x34b   :  { %2724 = vmatprep.subr.bf16.mxu1 %v2836_v33  ;;  %2507 = vmatpush3.bf16.msra.mxu0 %v2847_v45 }
 0x34c   :  { %2508 = vmatprep.subr.bf16.mxu0 %v2849_v47  ;;  %v2874_v47 = vld [vmem:[%s3434_s9 + $0x100] sm:$0xff]  }
 0x34e   :  { %2725 = vmatpush3.bf16.msra.mxu1 %v2836_v33 }
 0x34f   :  { %2726 = vmatprep.subr.bf16.mxu1 %v2837_v34  ;;  %2509 = vmatpush3.bf16.msra.mxu0 %v2851_v49 }
 0x350   :  { %2510 = vmatprep.subr.bf16.mxu0 %v2853_v51 }
 0x352   :  { %2727 = vmatpush3.bf16.msra.mxu1 %v2837_v34 }
 0x353   :  { %2728 = vmatprep.subr.bf16.mxu1 %v2838_v35  ;;  %2511 = vmatpush3.bf16.msra.mxu0 %v2855_v53 }
 0x354   :  { %2512 = vmatprep.subr.bf16.mxu0 %v2857_v55  ;;  %v2876_v55 = vld [vmem:[%s3434_s9 + $0x148] sm:$0xff]  }
 0x356   :  { %2729 = vmatpush3.bf16.msra.mxu1 %v2838_v35 }
 0x357   :  { %2730 = vmatprep.subr.bf16.mxu1 %v2839_v36  ;;  %2513 = vmatpush3.bf16.msra.mxu0 %v2859_v57 }
 0x358   :  { %2514 = vmatprep.subr.bf16.mxu0 %v2861_v59 }
 0x35a   :  { %2731 = vmatpush3.bf16.msra.mxu1 %v2839_v36 }
 0x35b   :  { %2482 = vmatprep.subr.bf16.mxu1 %v2840_v38  ;;  %2515 = vmatpush3.bf16.msra.mxu0 %v2863_v61  ;;  %v2879_v61 = vld [vmem:[%s3434_s9 + $0x188] sm:$0xff]  }
 0x35c   :  { %2516 = vmatprep.subr.bf16.mxu0 %v2865_v63  ;;  %v2880_v63 = vld [vmem:[%s3434_s9 + $0x150] sm:$0xff]  }
 0x35d   :  { %2733 = vmatmul.mubr.msk.bf16.vlgmr.msra.gmra.mrb[8].mxu1 %vm1144_vm5, %v1076_v37 }
 0x35e   :  { %2483 = vmatpush3.bf16.msra.mxu1 %v2842_v40 }
 0x35f   :  { %2484 = vmatprep.subr.bf16.mxu1 %v2844_v42  ;;  %2517 = vmatpush3.bf16.msra.mxu0 %v2867_v1  ;;  %v2882_v1 = vld [vmem:[%s3434_s9 + $0x110] sm:$0xff]  }
 0x360   :  { %2518 = vmatprep.subr.bf16.mxu0 %v2869_v3  ;;  %v2884_v3 = vld [vmem:[%s3434_s9 + $0x158] sm:$0xff]  }
 0x362   :  { %2485 = vmatpush3.bf16.msra.mxu1 %v2846_v44 }
 0x363   :  { %2486 = vmatprep.subr.bf16.mxu1 %v2848_v46  ;;  %2519 = vmatpush3.bf16.msra.mxu0 %v2871_v5  ;;  %v2886_v5 = vld [vmem:[%s3434_s9 + $0x118] sm:$0xff]  }
 0x364   :  { %2548 = vmatprep.subr.bf16.mxu0 %v2873_v7  ;;  %v2888_v7 = vld [vmem:[%s3434_s9 + $0x160] sm:$0xff]  }
 0x366   :  { %2487 = vmatpush3.bf16.msra.mxu1 %v2850_v48  ;;  %v2875_v48 = vld [vmem:[%s3434_s9 + $0x180] sm:$0xff]  }
 0x367   :  { %2488 = vmatprep.subr.bf16.mxu1 %v2852_v50 }
 0x36a   :  { %2489 = vmatpush3.bf16.msra.mxu1 %v2854_v52 }
 0x36b   :  { %2490 = vmatprep.subr.bf16.mxu1 %v2856_v54 }
 0x36e   :  { %2491 = vmatpush3.bf16.msra.mxu1 %v2858_v56  ;;  %v2877_v56 = vld [vmem:[%s3434_s9 + $0x1c8] sm:$0xff]  }
 0x36f   :  { %2492 = vmatprep.subr.bf16.mxu1 %v2860_v58 }
 0x372   :  { %2493 = vmatpush3.bf16.msra.mxu1 %v2862_v60  ;;  %v2878_v60 = vld [vmem:[%s3434_s9 + $0x108] sm:$0xff]  }
 0x373   :  { %2494 = vmatprep.subr.bf16.mxu1 %v2864_v62 }
 0x376   :  { %2495 = vmatpush3.bf16.msra.mxu1 %v2866_v0  ;;  %v2881_v0 = vld [vmem:[%s3434_s9 + $0x1d0] sm:$0xff]  }
 0x377   :  { %2496 = vmatprep.subr.bf16.mxu1 %v2868_v2  ;;  %v2883_v2 = vld [vmem:[%s3434_s9 + $0x190] sm:$0xff]  }
 0x37a   :  { %2497 = vmatpush3.bf16.msra.mxu1 %v2870_v4  ;;  %v2885_v4 = vld [vmem:[%s3434_s9 + $0x1d8] sm:$0xff]  }
 0x37b   :  { %2526 = vmatprep.subr.bf16.mxu1 %v2872_v6  ;;  %v2887_v6 = vld [vmem:[%s3434_s9 + $0x198] sm:$0xff]  }
 0x418   :  { %v2748_v8 = vpop.f32.mrb[8].mxu0 }
 0x419   :  { %v1366_v9 = vpop.f32.mrb[9].mxu0 }
 0x41a   :  { %v2749_v10 = vpop.f32.mrb[10].mxu0 }
 0x41b   :  { %v1369_v11 = vpop.f32.mrb[11].mxu0  ;;  %v2891_v10 = vld [vmem:[%s3434_s9 + $0x1a0] sm:$0xff]  }
 0x41c   :  { %v2720_v12 = vpop.f32.mrb[4].mxu1  ;;  %v2892_v11 = vld [vmem:[%s3434_s9 + $0x168] sm:$0xff]  }
 0x41d   :  { %v1185_v13 = vpop.f32.mrb[5].mxu1 }
 0x41e   :  { %v2721_v14 = vpop.f32.mrb[6].mxu1 }
 0x41f   :  { %v1188_v15 = vpop.f32.mrb[7].mxu1  ;;  %v2895_v14 = vld [vmem:[%s3434_s9 + $0x1a8] sm:$0xff]  }
 0x420   :  { %v2896_v15 = vld [vmem:[%s3434_s9 + $0x170] sm:$0xff]  }
 0x430   :  { %v2734_v16 = vpop.f32.mrb[8].mxu1 }
 0x431   :  { %v1275_v17 = vadd.f32 %v2734_v16, %v2720_v12  ;;  %v1267_v18 = vpop.f32.mrb[9].mxu1  ;;  %v2893_v12 = vld [vmem:[%s3434_s9 + $0x1e8] sm:$0xff]   ;;  %v2897_v16 = vld [vmem:[%s3434_s9 + $0x1f0] sm:$0xff]  }
 0x432   :  { %v1268_v20 = vadd.f32 %v1267_v18, %v1185_v13  ;;  %v2735_v21 = vpop.f32.mrb[10].mxu1  ;;  %v2894_v13 = vld [vmem:[%s3434_s9 + $0x128] sm:$0xff]   ;;  %v2899_v18 = vld [vmem:[%s3434_s9 + $0x1b0] sm:$0xff]  }
 0x433   :  { %v1380_v22 = vadd.f32 %v2748_v8, %v1275_v17  ;;  %v1270_v23 = vpop.f32.mrb[11].mxu1  ;;  %v2889_v8 = vld [vmem:[%s3434_s9 + $0x1e0] sm:$0xff]   ;;  %v2898_v17 = vld [vmem:[%s3434_s9 + $0x130] sm:$0xff]   ;;  %v2902_v21 = vld [vmem:[%s3434_s9 + $0x138] sm:$0xff]  }
 0x434   :  { %v1379_v24 = vadd.f32 %v1366_v9, %v1268_v20  ;;  %v2890_v9 = vld [vmem:[%s3434_s9 + $0x120] sm:$0xff]   ;;  %v2901_v20 = vld [vmem:[%s3434_s9 + $0x1f8] sm:$0xff]  }
 0x435   :  { %v1388_v25 = vadd.f32 %v2320_v19, %v1380_v22  ;;  %v2903_v22 = vld [vmem:[%s3434_s9 + $0x1b8] sm:$0xff]  }
 0x436   :  { %v1387_v26 = vadd.f32 %v2320_v19, %v1379_v24  ;;  %v2900_v19 = vld [vmem:[%s3434_s9 + $0x178] sm:$0xff]  }
 0x437   :  { %v1390_v27 = vmax.f32 %v1388_v25, 0.0 }
 0x438   :  { %v1389_v28 = vmax.f32 %v1387_v26, 0.0 }
 0x439   :  { %v2323_v29 = vrot.slane %v1390_v27, 10  ;;  %v1413_v30 = vrot.slane %v1390_v27, 7  ;;  %v2322_v31 = vrot.slane %v1390_v27, 9  ;;  %v2325_v32 = vrot.slane %v1390_v27, 12 }
 0x43a   :  { %v1392_v33 = vrot.slane %v1389_v28, 1  ;;  %v1396_v34 = vrot.slane %v1389_v28, 3  ;;  %v1394_v35 = vrot.slane %v1389_v28, 2  ;;  %v1400_v36 = vrot.slane %v1389_v28, 5 }
 0x43b   :  { %v1430_v37 = vsel %vm1429_vm6, %v1389_v28, %v1413_v30  ;;  %v1404_v38 = vrot.slane %v1389_v28, 7  ;;  %v1420_v39 = vrot.slane %v1413_v30, 7  ;;  %v1398_v43 = vrot.slane %v1389_v28, 4 }
 0x43c   :  { %v1431_v40 = vsel %vm1429_vm6, %v1392_v33, %v1390_v27  ;;  %v1433_v41 = vsel %vm1429_vm6, %v1396_v34, %v2323_v29  ;;  %v1432_v42 = vsel %vm1429_vm6, %v1394_v35, %v2322_v31  ;;  %v1435_v49 = vsel %vm1429_vm6, %v1400_v36, %v2325_v32 }
 0x43d   :  { %v1439_v44 = vpack.c.bf16 %v1431_v40, %v1431_v40  ;;  %v1441_v45 = vpack.c.bf16 %v1433_v41, %v1433_v41  ;;  %v1440_v46 = vpack.c.bf16 %v1432_v42, %v1432_v42  ;;  %v1438_v50 = vpack.c.bf16 %v1430_v37, %v1430_v37 }
 0x43e   :  { %v1437_v51 = vsel %vm1429_vm6, %v1404_v38, %v1420_v39  ;;  %v2324_v52 = vrot.slane %v1390_v27, 11  ;;  %v1402_v53 = vrot.slane %v1389_v28, 6  ;;  %v2326_v57 = vrot.slane %v1390_v27, 13  ;;  %v2327_v27 = vld [vmem:[%s3436_s10] ss:$0 sm:$0xff] }
 0x43f   :  { %1997 = vmatprep.mubr.bf16.mxu1 %v1439_v44  ;;  %2037 = vmatprep.mubr.bf16.mxu0 %v1441_v45  ;;  %v1445_v54 = vpack.c.bf16 %v1437_v51, %v1437_v51  ;;  %v1443_v58 = vpack.c.bf16 %v1435_v49, %v1435_v49 }
 0x440   :  { %1998 = vmatmul.mubr.bf16.vlgmr.msra.gmra.mrb[12].mxu1 %v1438_v50  ;;  %2038 = vmatmul.mubr.bf16.vlgmr.msra.gmra.mrb[12].mxu0 %v1440_v46  ;;  %v1434_v59 = vsel %vm1429_vm6, %v1398_v43, %v2324_v52  ;;  %v1436_v62 = vsel %vm1429_vm6, %v1402_v53, %v2326_v57  ;;  %v2126_v53 = vlaneseq }
 0x441   :  { %2527 = vmatpush3.bf16.msra.mxu1 %v2874_v47  ;;  %2549 = vmatpush3.bf16.msra.mxu0 %v2875_v48  ;;  %v1442_v23 = vpack.c.bf16 %v1434_v59, %v1434_v59  ;;  %v1444_v24 = vpack.c.bf16 %v1436_v62, %v1436_v62 }
 0x442   :  { %2077 = vmatprep.mubr.bf16.mxu1 %v1443_v58  ;;  %2117 = vmatprep.mubr.bf16.mxu0 %v1445_v54  ;;  %v2127_v54 = vand.u32 127, %v2126_v53 }
 0x443   :  { %2528 = vmatprep.subr.bf16.mxu1 %v2876_v55  ;;  %2550 = vmatprep.subr.bf16.mxu0 %v2877_v56 }
 0x444   :  { %vm2128_vm7 = vcmp.ge.s32.totalorder %v2127_v54, 32 }
 0x445   :  { %2529 = vmatpush3.bf16.msra.mxu1 %v2878_v60  ;;  %2551 = vmatpush3.bf16.msra.mxu0 %v2879_v61 }
 0x446   :  { %2530 = vmatprep.subr.bf16.mxu1 %v2880_v63  ;;  %2552 = vmatprep.subr.bf16.mxu0 %v2881_v0 }
 0x449   :  { %2531 = vmatpush3.bf16.msra.mxu1 %v2882_v1  ;;  %2553 = vmatpush3.bf16.msra.mxu0 %v2883_v2 }
 0x44a   :  { %2532 = vmatprep.subr.bf16.mxu1 %v2884_v3  ;;  %2554 = vmatprep.subr.bf16.mxu0 %v2885_v4 }
 0x44d   :  { %2533 = vmatpush3.bf16.msra.mxu1 %v2886_v5  ;;  %2555 = vmatpush3.bf16.msra.mxu0 %v2887_v6 }
 0x44e   :  { %2534 = vmatprep.subr.bf16.mxu1 %v2888_v7  ;;  %2556 = vmatprep.subr.bf16.mxu0 %v2889_v8 }
 0x451   :  { %2535 = vmatpush3.bf16.msra.mxu1 %v2890_v9  ;;  %2557 = vmatpush3.bf16.msra.mxu0 %v2891_v10 }
 0x452   :  { %2536 = vmatprep.subr.bf16.mxu1 %v2892_v11  ;;  %2558 = vmatprep.subr.bf16.mxu0 %v2893_v12 }
 0x455   :  { %2537 = vmatpush3.bf16.msra.mxu1 %v2894_v13  ;;  %2559 = vmatpush3.bf16.msra.mxu0 %v2895_v14 }
 0x456   :  { %2538 = vmatprep.subr.bf16.mxu1 %v2896_v15  ;;  %2560 = vmatprep.subr.bf16.mxu0 %v2897_v16 }
 0x459   :  { %2539 = vmatpush3.bf16.msra.mxu1 %v2898_v17  ;;  %2561 = vmatpush3.bf16.msra.mxu0 %v2899_v18 }
 0x45a   :  { %2540 = vmatprep.subr.bf16.mxu1 %v2900_v19  ;;  %2562 = vmatprep.subr.bf16.mxu0 %v2901_v20 }
 0x45d   :  { %2541 = vmatpush3.bf16.msra.mxu1 %v2902_v21  ;;  %2563 = vmatpush3.bf16.msra.mxu0 %v2903_v22 }
 0x460   :  { %2078 = vmatmul.mubr.bf16.vlgmr.msra.gmra.mrb[16].mxu1 %v1442_v23  ;;  %2118 = vmatmul.mubr.bf16.vlgmr.msra.gmra.mrb[16].mxu0 %v1444_v24 }
 0x513   :  { %v2498_v25 = vpop.f32.mrb[12].mxu1  ;;  %v2520_v26 = vpop.f32.mrb[12].mxu0 }
 0x514   :  { %v2499_v28 = vpop.f32.mrb[13].mxu1  ;;  %v2521_v29 = vpop.f32.mrb[13].mxu0 }
 0x515   :  { %v2500_v30 = vadd.f32 %v2499_v28, %v2498_v25  ;;  %v2522_v31 = vadd.f32 %v2521_v29, %v2520_v26  ;;  %v2501_v32 = vpop.f32.mrb[14].mxu1  ;;  %v2523_v33 = vpop.f32.mrb[14].mxu0 }
 0x516   :  { %v2502_v34 = vpop.f32.mrb[15].mxu1  ;;  %v2524_v35 = vpop.f32.mrb[15].mxu0 }
 0x517   :  { %v2000_v36 = vadd.f32 %v2500_v30, %v2327_v27 }
 0x519   :  { %v2040_v37 = vadd.f32 %v2522_v31, %v2000_v36 }
 0x533   :  { %v2542_v38 = vpop.f32.mrb[16].mxu1  ;;  %v2564_v39 = vpop.f32.mrb[16].mxu0 }
 0x534   :  { %v2543_v40 = vpop.f32.mrb[17].mxu1  ;;  %v2565_v41 = vpop.f32.mrb[17].mxu0 }
 0x535   :  { %v2544_v42 = vadd.f32 %v2543_v40, %v2542_v38  ;;  %v2566_v43 = vadd.f32 %v2565_v41, %v2564_v39  ;;  %v2545_v44 = vpop.f32.mrb[18].mxu1  ;;  %v2567_v45 = vpop.f32.mrb[18].mxu0 }
 0x536   :  { %v2546_v46 = vpop.f32.mrb[19].mxu1  ;;  %v2568_v47 = vpop.f32.mrb[19].mxu0 }
 0x537   :  { %v2080_v48 = vadd.f32 %v2544_v42, %v2040_v37 }
 0x539   :  { %v2120_v49 = vadd.f32 %v2566_v43, %v2080_v48 }
 0x53b   :  { %v2125_v50 = vmax.f32 %v2120_v49, 0.0 }
 0x53d   :  { %v2129_v51 = vmul.f32 0.5, %v2125_v50 }
 0x53f   :  { %v2130_v52 = vmul.f32 1.442695, %v2129_v51 }
 0x541   :  { %2904 = vpow2.f32 %v2130_v52 }
 0x54b   :  { %v2905_v55 = vpop.eup %2904 }
 0x54c   :  { %v2132_v56 = vsel %vm2128_vm7, %v2905_v55, %v2125_v50 }
 0x54d   :  { %2134 = vst.msk [vmem:[%s3437_s11] sm:$0x3] %vm2133_vm8, %v2132_v56 }

</bundles_post_ra>
